<compile_context>
chip_gen: v6e
topology: v6e:2x2x1
jax: 0.10.0
libtpu: 0.0.40
codegen_flags: <defaults>
</compile_context>

<pallas_src>
import math

import jax
import jax.numpy as jnp
from jax.experimental import pallas as pl
from jax.experimental.pallas import tpu as pltpu

# ---------------- configuration (small, consistent with the module) ----------------
B = 2            # batch
S = 8            # tokens per batch element (humans in the state vector)
IN_DIM = 8       # initial_dim
EMBED = 64       # embed_dim


# ---------------------------------- kernel -----------------------------------------
def embedding_kernel(x_ref, w_ref, b_ref, o_ref):
    # x_ref: (B*S, IN_DIM)   w_ref: (IN_DIM, EMBED)   b_ref: (1, EMBED)
    # One MXU matmul + broadcast bias add.  Dropout is identity in eval mode.
    o_ref[...] = (
        jnp.dot(x_ref[...], w_ref[...], preferred_element_type=jnp.float32)
        + b_ref[...]
    )
    # TODO(synk): training-mode dropout (pltpu.prng_seed + stateful_bernoulli) omitted;
    # the reference forward is evaluated in eval mode where Dropout is the identity.


# --------------------------------- wrapper -----------------------------------------
def humans_state_vector_embedding(x, w, b):
    """x: (B, S, IN_DIM) f32;  w: (IN_DIM, EMBED);  b: (1, EMBED)  ->  (B, S, EMBED)."""
    batch, seq, in_dim = x.shape
    out_dim = w.shape[1]
    rows = batch * seq

    # Fold batch into rows: one lane-contiguous (rows, in_dim) slab, one matmul.
    x2 = x.reshape(rows, in_dim)

    out2 = pl.pallas_call(
        embedding_kernel,
        out_shape=jax.ShapeDtypeStruct((rows, out_dim), jnp.float32),
        grid=(1,),  # single invocation: no pipeline-step overhead, weights fetched once
        in_specs=[
            pl.BlockSpec((rows, in_dim), lambda i: (0, 0)),
            pl.BlockSpec((in_dim, out_dim), lambda i: (0, 0)),
            pl.BlockSpec((1, out_dim), lambda i: (0, 0)),
        ],
        out_specs=pl.BlockSpec((rows, out_dim), lambda i: (0, 0)),
        compiler_params=pltpu.CompilerParams(
            dimension_semantics=("arbitrary",)),
    )(x2, w, b)

    return out2.reshape(batch, seq, out_dim)


# -------------------------- deterministic parameter init ---------------------------
def init_params(key):
    # nn.init.xavier_normal_ on a (out_features, in_features) weight; bias = 0.
    std = math.sqrt(2.0 / (IN_DIM + EMBED))
    w_torch_layout = jax.random.normal(key, (EMBED, IN_DIM), jnp.float32) * std
    w = w_torch_layout.T                       # store as (in, out) for x @ W
    b = jnp.zeros((1, EMBED), jnp.float32)
    return w, b


# ------------------------------ pure-JAX reference ----------------------------------
def reference(x, w, b):
    # Linear + eval-mode Dropout (identity).
    return x @ w + b[0]


# ------------------------------------- main -----------------------------------------
if __name__ == "__main__":
    key = jax.random.PRNGKey(0)
    kx, kp = jax.random.split(key)
    x = jax.random.normal(kx, (B, S, IN_DIM), jnp.float32)
    w, b = init_params(kp)

    out = humans_state_vector_embedding(x, w, b)
    out = jax.block_until_ready(out)

    ref = reference(x, w, b)
    max_err = float(jnp.max(jnp.abs(out - ref)))
    assert jnp.allclose(out, ref, rtol=2e-3, atol=2e-3), f"max_err={max_err}"
    print("KERNEL_OK")
</pallas_src>

<mosaic_0001>
module attributes {stable_mosaic.version = 11 : i64} {
  func.func @embedding_kernel(%arg0: i32, %arg1: memref<16x8xf32, #tpu.memory_space<vmem>>, %arg2: memref<8x64xf32, #tpu.memory_space<vmem>>, %arg3: memref<1x64xf32, #tpu.memory_space<vmem>>, %arg4: memref<16x64xf32, #tpu.memory_space<vmem>>) attributes {dimension_semantics = [#tpu.dimension_semantics<arbitrary>], iteration_bounds = array<i64: 1>, scalar_prefetch = 0 : i64, scratch_operands = 0 : i64, tpu.core_type = #tpu.core_type<tc>, window_params = [{pipeline_mode = #tpu.pipeline_mode<synchronous>, transform_indices = @transform_0, window_bounds = array<i64: 16, 8>}, {pipeline_mode = #tpu.pipeline_mode<synchronous>, transform_indices = @transform_1, window_bounds = array<i64: 8, 64>}, {pipeline_mode = #tpu.pipeline_mode<synchronous>, transform_indices = @transform_2, window_bounds = array<i64: 1, 64>}, {pipeline_mode = #tpu.pipeline_mode<synchronous>, transform_indices = @transform_3, window_bounds = array<i64: 16, 64>}]} {
    %c0 = arith.constant 0 : index
    %c0_0 = arith.constant 0 : index
    %0 = vector.load %arg1[%c0, %c0_0] : memref<16x8xf32, #tpu.memory_space<vmem>>, vector<16x8xf32>
    %c0_1 = arith.constant 0 : index
    %c0_2 = arith.constant 0 : index
    %1 = vector.load %arg2[%c0_1, %c0_2] : memref<8x64xf32, #tpu.memory_space<vmem>>, vector<8x64xf32>
    %cst = arith.constant dense<0.000000e+00> : vector<16x64xf32>
    %2 = tpu.matmul %0, %1, %cst {dimension_numbers = #tpu.dot_dimension_numbers<[1], [0], [0], [1], [0, 0, 1, 1], [], []>} : vector<16x8xf32>, vector<8x64xf32>, vector<16x64xf32> -> vector<16x64xf32>
    %c0_3 = arith.constant 0 : index
    %c0_4 = arith.constant 0 : index
    %3 = vector.load %arg3[%c0_3, %c0_4] : memref<1x64xf32, #tpu.memory_space<vmem>>, vector<1x64xf32>
    %4 = vector.broadcast %3 : vector<1x64xf32> to vector<16x64xf32>
    %5 = arith.addf %2, %4 : vector<16x64xf32>
    %c0_5 = arith.constant 0 : index
    %c0_6 = arith.constant 0 : index
    %6 = vector.load %arg4[%c0_5, %c0_6] : memref<16x64xf32, #tpu.memory_space<vmem>>, vector<16x64xf32>
    tpu.vector_store %arg4[%c0_5, %c0_6], %5 {strides = array<i32>} : memref<16x64xf32, #tpu.memory_space<vmem>>, vector<16x64xf32>,
    return
  }
  func.func @transform_0(%arg0: i32) -> (i32, i32) {
    %c0_i32 = arith.constant 0 : i32
    %c0_i32_0 = arith.constant 0 : i32
    %c0_i32_1 = arith.constant 0 : i32
    return %c0_i32, %c0_i32_0 : i32, i32
  }
  func.func @transform_1(%arg0: i32) -> (i32, i32) {
    %c0_i32 = arith.constant 0 : i32
    %c0_i32_0 = arith.constant 0 : i32
    %c0_i32_1 = arith.constant 0 : i32
    return %c0_i32, %c0_i32_0 : i32, i32
  }
  func.func @transform_2(%arg0: i32) -> (i32, i32) {
    %c0_i32 = arith.constant 0 : i32
    %c0_i32_0 = arith.constant 0 : i32
    %c0_i32_1 = arith.constant 0 : i32
    return %c0_i32, %c0_i32_0 : i32, i32
  }
  func.func @transform_3(%arg0: i32) -> (i32, i32) {
    %c0_i32 = arith.constant 0 : i32
    %c0_i32_0 = arith.constant 0 : i32
    %c0_i32_1 = arith.constant 0 : i32
    return %c0_i32, %c0_i32_0 : i32, i32
  }
}

</mosaic_0001>

<bundles_post_ra>
// kernel: tpu_custom_call.1
= control target key start
LH: loop header
LB: loop body
LE: loop exit
PB: predicated region body
PF: predicated region fallthrough
CT: control target
= control target key end

     0   :  { %vm25_vm0 = vcmask 64512   ;;  %s200_s0 = inlined_call_operand.vmem [shape: f32[16,8], index: 0, kind: input, shape index: {}]   ;;  %s201_s1 = inlined_call_operand.vmem [shape: f32[8,64], index: 1, kind: input, shape index: {}]   ;;  %s202_s2 = inlined_call_operand.vmem [shape: f32[1,64], index: 2, kind: input, shape index: {}]   ;;  %s203_s3 = inlined_call_operand.hbm [shape: f32[16,64], index: 3, kind: output, shape index: {}]  }
   0x1   :  { %v17_v0 = vld [vmem:[%s201_s1] sm:$0xff]  ;;  %v16_v2 = vld [vmem:[%s200_s0 + $0x8] sm:$0xff] }
   0x2   :  { %v15_v1 = vld [vmem:[%s200_s0] sm:$0xff]  ;;  %132 = vmatprep.subr.mxu0 %v17_v0 }
   0x3   :  { %134 = vmatprep.mubr.msk.f32.mxu0 %vm25_vm0, %v15_v1 }
   0x4   :  { %8 = vsyncpa [#allocation3], 0  ;;  %133 = vmatpush3.msra.mxu0 %v17_v0  ;;  %v126_v3 = vld [vmem:[%s202_s2] ss:$0 sm:$0xff]  ;;  %s162_s20 = smov [#allocation2]   ;;  %vm107_vm1 = vcmask 523264  }
   0x5   :  { %135 = vmatmul.mubr.msk.f32.vlgmr.msra.gmra.mxu0 %vm25_vm0, %v16_v2  ;;  %s115_s1 = sshll.u32 %s162_s20, 4  ;;  %s116_s1 = int_to_ptr.vmem [resolvable:$true] %s115_s1 }
   0x6   :  { %s140_s0 = scalar_lea.vmem %s116_s1, 256  ;;  %p145_p1 = scmp.lt.s32.totalorder %s116_s1, %s116_s1 }
   0x7   :  { %p141_p0 = scmp.ne.s32.totalorder %s116_s1, %s140_s0  ;;  %p146_p2 = scmp.lt.s32.totalorder %s140_s0, %s140_s0 }
   0x9   :  { %p147_p3 = por %p146_p2, %p145_p1 }
   0xb   :  { %p148_p4 = pnand %p147_p3, %p141_p0 }
  0xc5   :  { %v136_v4 = vpop.f32.mrf.mxu0 }
  0xc6   :  { %v104_v5 = vadd.f32 %v136_v4, %v126_v3 }
  0xc7   :  { %v98_v6 = vpop.f32.mrf.mxu0 }
  0xc8   :  { %109 = vst.msk [vmem:[#allocation2 + $0x8] sm:$0xff] %vm107_vm1, %v104_v5  ;;  %v99_v7 = vadd.f32 %v126_v3, %v98_v6 }
  0xca   :  { %108 = vst.msk [vmem:[#allocation2] sm:$0xff] %vm107_vm1, %v99_v7 }
  0xcb   :  { %151 = shalt.err (!%p148_p4)
}
  0xcc   :  { %s163_s21 = smov 128   ;;  %s164_s22 = smov 8  }
  0xcd   :  { %121 = dma.vmem_to_hbm [thread:$0]  %s116_s1, 256, %s203_s3, [#allocation3], %s163_s21, %s163_s21, %s164_s22  }
  0xce   :  { %160 = dma.done.wait [#allocation3], 256  }
  0xcf   :  { %161 = vsyncadd [#allocation3], 4294967040 }
  0xd0   :  { %125 = vsyncpa [#allocation3], 1 }

</bundles_post_ra>
